<compile_context>
chip_gen: v5e
topology: v5e:2x2
jax: 0.10.0
libtpu: 0.0.40
codegen_flags: <defaults>
</compile_context>

<pallas_src>
import jax
import jax.numpy as jnp
from jax.experimental import pallas as pl
from jax.experimental.pallas import tpu as pltpu
from jax.scipy.special import gammaln, logsumexp


def hmm_poisson_forward(x, lambdas, transition_matrix, log_state_priors):
    """x: (T, M) integer counts. Returns scalar log p(x)."""
    T, M = x.shape
    N = lambdas.shape[0]

    xf = x.astype(jnp.float32)
    # TODO(synk): lgamma has no Mosaic/Pallas-TPU lowering; the log(x!) term of
    # the Poisson pmf is computed and reduced over M here in plain JAX and
    # streamed into the kernel as a (T, 1) column.
    logfact = jnp.sum(gammaln(xf + 1.0), axis=1, keepdims=True)        # (T, 1)

    loglam = jnp.log(lambdas).astype(jnp.float32)                      # (N, M)
    loglam_t = loglam.T                                                # (M, N)
    lam_sum_row = jnp.sum(lambdas, axis=1).astype(jnp.float32).reshape(1, N)
    lam_sum_col = lam_sum_row.reshape(N, 1)
    log_trans = jnp.log(transition_matrix).astype(jnp.float32)         # [next, prev]
    log_trans_t = log_trans.T                                          # [prev, next]
    prior_col = log_state_priors.astype(jnp.float32).reshape(N, 1)

    # ---- time chunking ------------------------------------------------------
    if T <= 512:
        t_chunk = T + (T % 2)          # single even-length chunk
    else:
        t_chunk = 256                  # even, multiple of 8 sublanes
    t_pad = ((T + t_chunk - 1) // t_chunk) * t_chunk
    num_chunks = t_pad // t_chunk
    if t_pad != T:                     # zero-pad: padded steps are captured-past
        xf = jnp.pad(xf, ((0, t_pad - T), (0, 0)))
        logfact = jnp.pad(logfact, ((0, t_pad - T), (0, 0)))

    n_pairs = t_chunk // 2
    unroll = True if n_pairs <= 32 else 8
    last_is_col = ((T - 1) % 2 == 0)          # layout of alpha at t = T-1
    last_shape = (N, 1) if last_is_col else (1, N)

    def kernel(x_ref, logfact_ref, loglam_t_ref, loglam_ref,
               lam_sum_row_ref, lam_sum_col_ref,
               log_trans_ref, log_trans_t_ref, prior_ref,
               out_ref, em_ref, alpha_row_ref, alpha_last_ref):
        c = pl.program_id(0)

        # Emission log-probs for this chunk, states on lanes (used by odd t):
        #   em[t, j] = sum_m x[t,m]*log(lam[j,m]) - sum_m lam[j,m] - log(x[t]!)
        em_ref[...] = (jnp.dot(x_ref[...], loglam_t_ref[...],
                               preferred_element_type=jnp.float32)
                       - lam_sum_row_ref[...] - logfact_ref[...])

        @pl.when(c == 0)
        def _init():
            alpha_row_ref[...] = jnp.zeros_like(alpha_row_ref)
            alpha_last_ref[...] = jnp.zeros_like(alpha_last_ref)

        # Loop-invariant tiles, hoisted once (each fits in a single vreg).
        lt = log_trans_ref[...]            # (N, N)  [next i, prev k]
        ltt = log_trans_t_ref[...]         # (N, N)  [prev k, next j]
        ll = loglam_ref[...]               # (N, M)
        lam_c = lam_sum_col_ref[...]       # (N, 1)
        prior = prior_ref[...]             # (N, 1)

        def pair_body(p, alpha_row):
            t_even = c * t_chunk + 2 * p

            # Emission column for the even step (states on sublanes).  Depends
            # only on the observations, so it overlaps the recursion's chain.
            x_row = x_ref[pl.ds(2 * p, 1), :]                             # (1, M)
            em_col = (jnp.sum(ll * x_row, axis=1, keepdims=True)
                      - lam_c - logfact_ref[pl.ds(2 * p, 1), :])          # (N, 1)

            # -- half-step A: alpha(t_even) as a column (next state: sublanes)
            m1 = lt + alpha_row                                           # (N, N)
            mx1 = jnp.max(m1, axis=1, keepdims=True)                      # (N, 1)
            s1 = jnp.sum(jnp.exp(m1 - mx1), axis=1, keepdims=True)        # (N, 1)
            a_col = em_col + mx1 + jnp.log(s1)
            a_col = jnp.where(t_even == 0, em_col + prior, a_col)         # init
            if last_is_col:
                alpha_last_ref[...] = jnp.where(t_even == T - 1, a_col,
                                                alpha_last_ref[...])

            # -- half-step B: alpha(t_even + 1) as a row (next state: lanes)
            m2 = ltt + a_col                                              # (N, N)
            mx2 = jnp.max(m2, axis=0, keepdims=True)                      # (1, N)
            s2 = jnp.sum(jnp.exp(m2 - mx2), axis=0, keepdims=True)        # (1, N)
            a_row = em_ref[pl.ds(2 * p + 1, 1), :] + mx2 + jnp.log(s2)    # (1, N)
            if not last_is_col:
                alpha_last_ref[...] = jnp.where(t_even + 1 == T - 1, a_row,
                                                alpha_last_ref[...])
            return a_row

        alpha_row_ref[...] = jax.lax.fori_loop(
            0, n_pairs, pair_body, alpha_row_ref[...], unroll=unroll)

        @pl.when(c == num_chunks - 1)
        def _finalize():
            a = alpha_last_ref[...]
            axis = 0 if last_is_col else 1
            mx = jnp.max(a, axis=axis, keepdims=True)                     # (1, 1)
            out_ref[...] = mx + jnp.log(
                jnp.sum(jnp.exp(a - mx), axis=axis, keepdims=True))

    def full(shape):
        return pl.BlockSpec(shape, lambda c: (0,) * len(shape))

    out = pl.pallas_call(
        kernel,
        out_shape=jax.ShapeDtypeStruct((1, 1), jnp.float32),
        grid_spec=pltpu.PrefetchScalarGridSpec(
            num_scalar_prefetch=0,
            grid=(num_chunks,),
            in_specs=[
                pl.BlockSpec((t_chunk, M), lambda c: (c, 0)),   # x (float)
                pl.BlockSpec((t_chunk, 1), lambda c: (c, 0)),   # sum_m log(x!)
                full((M, N)),    # log(lambda)^T  (MXU emission matmul)
                full((N, M)),    # log(lambda)    (per-step emission column)
                full((1, N)),    # sum_m lambda   (row)
                full((N, 1)),    # sum_m lambda   (column)
                full((N, N)),    # log transition        [next, prev]
                full((N, N)),    # log transition^T      [prev, next]
                full((N, 1)),    # log state priors (column)
            ],
            out_specs=pl.BlockSpec((1, 1), lambda c: (0, 0)),
            scratch_shapes=[
                pltpu.VMEM((t_chunk, N), jnp.float32),   # emission rows
                pltpu.VMEM((1, N), jnp.float32),         # alpha carry (row)
                pltpu.VMEM(last_shape, jnp.float32),     # alpha at t = T-1
            ],
        ),
        compiler_params=pltpu.CompilerParams(
            dimension_semantics=("arbitrary",)),
    )(xf, logfact, loglam_t, loglam, lam_sum_row, lam_sum_col,
      log_trans, log_trans_t, prior_col)
    return out[0, 0]


def reference_forward(x, lambdas, transition_matrix, log_state_priors):
    """Pure-JAX mirror of HMMPoisson.forward (emission_model + log_alpha_calc)."""
    xf = x.astype(jnp.float32)
    log_em = (xf @ jnp.log(lambdas).T
              - jnp.sum(lambdas, axis=1)[None, :]
              - jnp.sum(gammaln(xf + 1.0), axis=1)[:, None])              # (T, N)
    log_trans = jnp.log(transition_matrix)
    alpha = log_em[0] + log_state_priors
    for t in range(1, x.shape[0]):
        alpha = log_em[t] + logsumexp(log_trans + alpha[None, :], axis=1)
    return logsumexp(alpha)


if __name__ == "__main__":
    # Small shapes consistent with the module: n_states=8, m_dimensions=4.
    N, M = 8, 4
    key = jax.random.PRNGKey(0)
    k1, k2, k3, k4 = jax.random.split(key, 4)

    # Parameter init mirroring HMMPoisson.__init__ shapes:
    #   transition_matrix = softmax(rand(N, N) * 10, dim=0)   (columns sum to 1)
    #   lambdas = exp(rand(N, M) * scale)  (scale reduced to keep Poisson rates
    #   moderate for f32 numerics)
    #   log_state_priors = log_softmax(randn(N))
    transition_matrix = jax.nn.softmax(jax.random.uniform(k1, (N, N)) * 10.0, axis=0)
    lambdas = jnp.exp(jax.random.uniform(k2, (N, M)) * 3.0)
    log_state_priors = jax.nn.log_softmax(jax.random.normal(k3, (N,)), axis=0)

    # T=8 exercises the row-layout finish, T=7 the column finish + tail padding.
    for T in (8, 7):
        x = jax.random.randint(jax.random.fold_in(k4, T), (T, M), 0, 10,
                               dtype=jnp.int32)
        log_prob = jax.block_until_ready(
            hmm_poisson_forward(x, lambdas, transition_matrix, log_state_priors))
        ref = reference_forward(x, lambdas, transition_matrix, log_state_priors)
        assert jnp.isfinite(log_prob), log_prob
        assert jnp.allclose(log_prob, ref, rtol=1e-4, atol=1e-2), (T, log_prob, ref)

    print("KERNEL_OK")
</pallas_src>

<mosaic_0001>
module attributes {stable_mosaic.version = 11 : i64} {
  func.func @kernel(%arg0: i32, %arg1: memref<8x4xf32, #tpu.memory_space<vmem>>, %arg2: memref<8x1xf32, #tpu.memory_space<vmem>>, %arg3: memref<4x8xf32, #tpu.memory_space<vmem>>, %arg4: memref<8x4xf32, #tpu.memory_space<vmem>>, %arg5: memref<1x8xf32, #tpu.memory_space<vmem>>, %arg6: memref<8x1xf32, #tpu.memory_space<vmem>>, %arg7: memref<8x8xf32, #tpu.memory_space<vmem>>, %arg8: memref<8x8xf32, #tpu.memory_space<vmem>>, %arg9: memref<8x1xf32, #tpu.memory_space<vmem>>, %arg10: memref<1x1xf32, #tpu.memory_space<vmem>>, %arg11: memref<8x8xf32, #tpu.memory_space<vmem>>, %arg12: memref<1x8xf32, #tpu.memory_space<vmem>>, %arg13: memref<1x8xf32, #tpu.memory_space<vmem>>) attributes {dimension_semantics = [#tpu.dimension_semantics<arbitrary>], iteration_bounds = array<i64: 1>, scalar_prefetch = 0 : i64, scratch_operands = 3 : i64, tpu.core_type = #tpu.core_type<tc>, window_params = [{transform_indices = @transform_0, window_bounds = array<i64: 8, 4>}, {transform_indices = @transform_1, window_bounds = array<i64: 8, 1>}, {pipeline_mode = #tpu.pipeline_mode<synchronous>, transform_indices = @transform_2, window_bounds = array<i64: 4, 8>}, {pipeline_mode = #tpu.pipeline_mode<synchronous>, transform_indices = @transform_3, window_bounds = array<i64: 8, 4>}, {pipeline_mode = #tpu.pipeline_mode<synchronous>, transform_indices = @transform_4, window_bounds = array<i64: 1, 8>}, {pipeline_mode = #tpu.pipeline_mode<synchronous>, transform_indices = @transform_5, window_bounds = array<i64: 8, 1>}, {pipeline_mode = #tpu.pipeline_mode<synchronous>, transform_indices = @transform_6, window_bounds = array<i64: 8, 8>}, {pipeline_mode = #tpu.pipeline_mode<synchronous>, transform_indices = @transform_7, window_bounds = array<i64: 8, 8>}, {pipeline_mode = #tpu.pipeline_mode<synchronous>, transform_indices = @transform_8, window_bounds = array<i64: 8, 1>}, {pipeline_mode = #tpu.pipeline_mode<synchronous>, transform_indices = @transform_9, window_bounds = array<i64: 1, 1>}]} {
    %c0 = arith.constant 0 : index
    %c0_0 = arith.constant 0 : index
    %0 = vector.load %arg1[%c0, %c0_0] : memref<8x4xf32, #tpu.memory_space<vmem>>, vector<8x4xf32>
    %c0_1 = arith.constant 0 : index
    %c0_2 = arith.constant 0 : index
    %1 = vector.load %arg3[%c0_1, %c0_2] : memref<4x8xf32, #tpu.memory_space<vmem>>, vector<4x8xf32>
    %cst = arith.constant dense<0.000000e+00> : vector<8x8xf32>
    %2 = tpu.matmul %0, %1, %cst {dimension_numbers = #tpu.dot_dimension_numbers<[1], [0], [0], [1], [0, 0, 1, 1], [], []>} : vector<8x4xf32>, vector<4x8xf32>, vector<8x8xf32> -> vector<8x8xf32>
    %c0_3 = arith.constant 0 : index
    %c0_4 = arith.constant 0 : index
    %3 = vector.load %arg5[%c0_3, %c0_4] : memref<1x8xf32, #tpu.memory_space<vmem>>, vector<1x8xf32>
    %4 = vector.broadcast %3 : vector<1x8xf32> to vector<8x8xf32>
    %5 = arith.subf %2, %4 : vector<8x8xf32>
    %c0_5 = arith.constant 0 : index
    %c0_6 = arith.constant 0 : index
    %6 = vector.load %arg2[%c0_5, %c0_6] : memref<8x1xf32, #tpu.memory_space<vmem>>, vector<8x1xf32>
    %7 = vector.broadcast %6 : vector<8x1xf32> to vector<8x8xf32>
    %8 = arith.subf %5, %7 : vector<8x8xf32>
    %c0_7 = arith.constant 0 : index
    %c0_8 = arith.constant 0 : index
    %9 = vector.load %arg11[%c0_7, %c0_8] : memref<8x8xf32, #tpu.memory_space<vmem>>, vector<8x8xf32>
    tpu.vector_store %arg11[%c0_7, %c0_8], %8 {strides = array<i32>} : memref<8x8xf32, #tpu.memory_space<vmem>>, vector<8x8xf32>,
    %c0_i32 = arith.constant 0 : i32
    %10 = arith.cmpi eq, %arg0, %c0_i32 : i32
    %11 = arith.extui %10 : i1 to i32
    %c0_i32_9 = arith.constant 0 : i32
    %12 = arith.cmpi ne, %11, %c0_i32_9 : i32
    scf.if %12 {
      %cst_109 = arith.constant 0.000000e+00 : f32
      %231 = vector.broadcast %cst_109 : f32 to vector<1x8xf32>
      %c0_110 = arith.constant 0 : index
      %c0_111 = arith.constant 0 : index
      %232 = vector.load %arg12[%c0_110, %c0_111] : memref<1x8xf32, #tpu.memory_space<vmem>>, vector<1x8xf32>
      tpu.vector_store %arg12[%c0_110, %c0_111], %231 {strides = array<i32>} : memref<1x8xf32, #tpu.memory_space<vmem>>, vector<1x8xf32>,
      %cst_112 = arith.constant 0.000000e+00 : f32
      %233 = vector.broadcast %cst_112 : f32 to vector<1x8xf32>
      %c0_113 = arith.constant 0 : index
      %c0_114 = arith.constant 0 : index
      %234 = vector.load %arg13[%c0_113, %c0_114] : memref<1x8xf32, #tpu.memory_space<vmem>>, vector<1x8xf32>
      tpu.vector_store %arg13[%c0_113, %c0_114], %233 {strides = array<i32>} : memref<1x8xf32, #tpu.memory_space<vmem>>, vector<1x8xf32>,
    } else {
    }
    %c0_10 = arith.constant 0 : index
    %c0_11 = arith.constant 0 : index
    %13 = vector.load %arg7[%c0_10, %c0_11] : memref<8x8xf32, #tpu.memory_space<vmem>>, vector<8x8xf32>
    %c0_12 = arith.constant 0 : index
    %c0_13 = arith.constant 0 : index
    %14 = vector.load %arg8[%c0_12, %c0_13] : memref<8x8xf32, #tpu.memory_space<vmem>>, vector<8x8xf32>
    %c0_14 = arith.constant 0 : index
    %c0_15 = arith.constant 0 : index
    %15 = vector.load %arg4[%c0_14, %c0_15] : memref<8x4xf32, #tpu.memory_space<vmem>>, vector<8x4xf32>
    %c0_16 = arith.constant 0 : index
    %c0_17 = arith.constant 0 : index
    %16 = vector.load %arg6[%c0_16, %c0_17] : memref<8x1xf32, #tpu.memory_space<vmem>>, vector<8x1xf32>
    %c0_18 = arith.constant 0 : index
    %c0_19 = arith.constant 0 : index
    %17 = vector.load %arg9[%c0_18, %c0_19] : memref<8x1xf32, #tpu.memory_space<vmem>>, vector<8x1xf32>
    %c0_20 = arith.constant 0 : index
    %c0_21 = arith.constant 0 : index
    %18 = vector.load %arg12[%c0_20, %c0_21] : memref<1x8xf32, #tpu.memory_space<vmem>>, vector<1x8xf32>
    %c0_i32_22 = arith.constant 0 : i32
    %c8_i32 = arith.constant 8 : i32
    %19 = arith.muli %arg0, %c8_i32 : i32
    %c2_i32 = arith.constant 2 : i32
    %20 = arith.muli %c2_i32, %c0_i32_22 : i32
    %21 = arith.addi %19, %20 : i32
    %c2_i32_23 = arith.constant 2 : i32
    %22 = arith.muli %c2_i32_23, %c0_i32_22 : i32
    %23 = arith.index_cast %22 : i32 to index
    %c0_24 = arith.constant 0 : index
    %24 = vector.load %arg1[%23, %c0_24] : memref<8x4xf32, #tpu.memory_space<vmem>>, vector<1x4xf32>
    %25 = vector.broadcast %24 : vector<1x4xf32> to vector<8x4xf32>
    %26 = arith.mulf %15, %25 : vector<8x4xf32>
    %cst_25 = arith.constant dense<0.000000e+00> : vector<8xf32>
    %27 = vector.multi_reduction <add>, %26, %cst_25 [1] : vector<8x4xf32> to vector<8xf32>
    %28 = vector.shape_cast %27 : vector<8xf32> to vector<8x1xf32>
    %29 = arith.subf %28, %16 : vector<8x1xf32>
    %c2_i32_26 = arith.constant 2 : i32
    %30 = arith.muli %c2_i32_26, %c0_i32_22 : i32
    %31 = arith.index_cast %30 : i32 to index
    %c0_27 = arith.constant 0 : index
    %32 = vector.load %arg2[%31, %c0_27] : memref<8x1xf32, #tpu.memory_space<vmem>>, vector<1x1xf32>
    %33 = vector.broadcast %32 : vector<1x1xf32> to vector<8x1xf32>
    %34 = arith.subf %29, %33 : vector<8x1xf32>
    %35 = vector.broadcast %18 : vector<1x8xf32> to vector<8x8xf32>
    %36 = arith.addf %13, %35 : vector<8x8xf32>
    %cst_28 = arith.constant dense<0xFF800000> : vector<8xf32>
    %37 = vector.multi_reduction <maximumf>, %36, %cst_28 [1] : vector<8x8xf32> to vector<8xf32>
    %38 = vector.shape_cast %37 : vector<8xf32> to vector<8x1xf32>
    %39 = vector.broadcast %38 : vector<8x1xf32> to vector<8x8xf32>
    %40 = arith.subf %36, %39 : vector<8x8xf32>
    %41 = math.exp %40 : vector<8x8xf32>
    %cst_29 = arith.constant dense<0.000000e+00> : vector<8xf32>
    %42 = vector.multi_reduction <add>, %41, %cst_29 [1] : vector<8x8xf32> to vector<8xf32>
    %43 = vector.shape_cast %42 : vector<8xf32> to vector<8x1xf32>
    %44 = arith.addf %34, %38 : vector<8x1xf32>
    %45 = math.log %43 : vector<8x1xf32>
    %46 = arith.addf %44, %45 : vector<8x1xf32>
    %c0_i32_30 = arith.constant 0 : i32
    %47 = arith.cmpi eq, %21, %c0_i32_30 : i32
    %48 = arith.addf %34, %17 : vector<8x1xf32>
    %49 = arith.select %47, %48, %46 : vector<8x1xf32>
    %50 = vector.broadcast %49 : vector<8x1xf32> to vector<8x8xf32>
    %51 = arith.addf %14, %50 : vector<8x8xf32>
    %cst_31 = arith.constant dense<0xFF800000> : vector<8xf32>
    %52 = vector.multi_reduction <maximumf>, %51, %cst_31 [0] : vector<8x8xf32> to vector<8xf32>
    %53 = vector.shape_cast %52 : vector<8xf32> to vector<1x8xf32>
    %54 = vector.broadcast %53 : vector<1x8xf32> to vector<8x8xf32>
    %55 = arith.subf %51, %54 : vector<8x8xf32>
    %56 = math.exp %55 : vector<8x8xf32>
    %cst_32 = arith.constant dense<0.000000e+00> : vector<8xf32>
    %57 = vector.multi_reduction <add>, %56, %cst_32 [0] : vector<8x8xf32> to vector<8xf32>
    %58 = vector.shape_cast %57 : vector<8xf32> to vector<1x8xf32>
    %c2_i32_33 = arith.constant 2 : i32
    %59 = arith.muli %c2_i32_33, %c0_i32_22 : i32
    %c1_i32 = arith.constant 1 : i32
    %60 = arith.addi %59, %c1_i32 : i32
    %61 = arith.index_cast %60 : i32 to index
    %c0_34 = arith.constant 0 : index
    %62 = vector.load %arg11[%61, %c0_34] : memref<8x8xf32, #tpu.memory_space<vmem>>, vector<1x8xf32>
    %63 = arith.addf %62, %53 : vector<1x8xf32>
    %64 = math.log %58 : vector<1x8xf32>
    %65 = arith.addf %63, %64 : vector<1x8xf32>
    %c1_i32_35 = arith.constant 1 : i32
    %66 = arith.addi %21, %c1_i32_35 : i32
    %c7_i32 = arith.constant 7 : i32
    %67 = arith.cmpi eq, %66, %c7_i32 : i32
    %c0_36 = arith.constant 0 : index
    %c0_37 = arith.constant 0 : index
    %68 = vector.load %arg13[%c0_36, %c0_37] : memref<1x8xf32, #tpu.memory_space<vmem>>, vector<1x8xf32>
    %69 = arith.select %67, %65, %68 : vector<1x8xf32>
    %c0_38 = arith.constant 0 : index
    %c0_39 = arith.constant 0 : index
    %70 = vector.load %arg13[%c0_38, %c0_39] : memref<1x8xf32, #tpu.memory_space<vmem>>, vector<1x8xf32>
    tpu.vector_store %arg13[%c0_38, %c0_39], %69 {strides = array<i32>} : memref<1x8xf32, #tpu.memory_space<vmem>>, vector<1x8xf32>,
    %c1_i32_40 = arith.constant 1 : i32
    %c8_i32_41 = arith.constant 8 : i32
    %71 = arith.muli %arg0, %c8_i32_41 : i32
    %c2_i32_42 = arith.constant 2 : i32
    %72 = arith.muli %c2_i32_42, %c1_i32_40 : i32
    %73 = arith.addi %71, %72 : i32
    %c2_i32_43 = arith.constant 2 : i32
    %74 = arith.muli %c2_i32_43, %c1_i32_40 : i32
    %75 = arith.index_cast %74 : i32 to index
    %c0_44 = arith.constant 0 : index
    %76 = vector.load %arg1[%75, %c0_44] : memref<8x4xf32, #tpu.memory_space<vmem>>, vector<1x4xf32>
    %77 = vector.broadcast %76 : vector<1x4xf32> to vector<8x4xf32>
    %78 = arith.mulf %15, %77 : vector<8x4xf32>
    %cst_45 = arith.constant dense<0.000000e+00> : vector<8xf32>
    %79 = vector.multi_reduction <add>, %78, %cst_45 [1] : vector<8x4xf32> to vector<8xf32>
    %80 = vector.shape_cast %79 : vector<8xf32> to vector<8x1xf32>
    %81 = arith.subf %80, %16 : vector<8x1xf32>
    %c2_i32_46 = arith.constant 2 : i32
    %82 = arith.muli %c2_i32_46, %c1_i32_40 : i32
    %83 = arith.index_cast %82 : i32 to index
    %c0_47 = arith.constant 0 : index
    %84 = vector.load %arg2[%83, %c0_47] : memref<8x1xf32, #tpu.memory_space<vmem>>, vector<1x1xf32>
    %85 = vector.broadcast %84 : vector<1x1xf32> to vector<8x1xf32>
    %86 = arith.subf %81, %85 : vector<8x1xf32>
    %87 = vector.broadcast %65 : vector<1x8xf32> to vector<8x8xf32>
    %88 = arith.addf %13, %87 : vector<8x8xf32>
    %cst_48 = arith.constant dense<0xFF800000> : vector<8xf32>
    %89 = vector.multi_reduction <maximumf>, %88, %cst_48 [1] : vector<8x8xf32> to vector<8xf32>
    %90 = vector.shape_cast %89 : vector<8xf32> to vector<8x1xf32>
    %91 = vector.broadcast %90 : vector<8x1xf32> to vector<8x8xf32>
    %92 = arith.subf %88, %91 : vector<8x8xf32>
    %93 = math.exp %92 : vector<8x8xf32>
    %cst_49 = arith.constant dense<0.000000e+00> : vector<8xf32>
    %94 = vector.multi_reduction <add>, %93, %cst_49 [1] : vector<8x8xf32> to vector<8xf32>
    %95 = vector.shape_cast %94 : vector<8xf32> to vector<8x1xf32>
    %96 = arith.addf %86, %90 : vector<8x1xf32>
    %97 = math.log %95 : vector<8x1xf32>
    %98 = arith.addf %96, %97 : vector<8x1xf32>
    %c0_i32_50 = arith.constant 0 : i32
    %99 = arith.cmpi eq, %73, %c0_i32_50 : i32
    %100 = arith.addf %86, %17 : vector<8x1xf32>
    %101 = arith.select %99, %100, %98 : vector<8x1xf32>
    %102 = vector.broadcast %101 : vector<8x1xf32> to vector<8x8xf32>
    %103 = arith.addf %14, %102 : vector<8x8xf32>
    %cst_51 = arith.constant dense<0xFF800000> : vector<8xf32>
    %104 = vector.multi_reduction <maximumf>, %103, %cst_51 [0] : vector<8x8xf32> to vector<8xf32>
    %105 = vector.shape_cast %104 : vector<8xf32> to vector<1x8xf32>
    %106 = vector.broadcast %105 : vector<1x8xf32> to vector<8x8xf32>
    %107 = arith.subf %103, %106 : vector<8x8xf32>
    %108 = math.exp %107 : vector<8x8xf32>
    %cst_52 = arith.constant dense<0.000000e+00> : vector<8xf32>
    %109 = vector.multi_reduction <add>, %108, %cst_52 [0] : vector<8x8xf32> to vector<8xf32>
    %110 = vector.shape_cast %109 : vector<8xf32> to vector<1x8xf32>
    %c2_i32_53 = arith.constant 2 : i32
    %111 = arith.muli %c2_i32_53, %c1_i32_40 : i32
    %c1_i32_54 = arith.constant 1 : i32
    %112 = arith.addi %111, %c1_i32_54 : i32
    %113 = arith.index_cast %112 : i32 to index
    %c0_55 = arith.constant 0 : index
    %114 = vector.load %arg11[%113, %c0_55] : memref<8x8xf32, #tpu.memory_space<vmem>>, vector<1x8xf32>
    %115 = arith.addf %114, %105 : vector<1x8xf32>
    %116 = math.log %110 : vector<1x8xf32>
    %117 = arith.addf %115, %116 : vector<1x8xf32>
    %c1_i32_56 = arith.constant 1 : i32
    %118 = arith.addi %73, %c1_i32_56 : i32
    %c7_i32_57 = arith.constant 7 : i32
    %119 = arith.cmpi eq, %118, %c7_i32_57 : i32
    %c0_58 = arith.constant 0 : index
    %c0_59 = arith.constant 0 : index
    %120 = vector.load %arg13[%c0_58, %c0_59] : memref<1x8xf32, #tpu.memory_space<vmem>>, vector<1x8xf32>
    %121 = arith.select %119, %117, %120 : vector<1x8xf32>
    %c0_60 = arith.constant 0 : index
    %c0_61 = arith.constant 0 : index
    %122 = vector.load %arg13[%c0_60, %c0_61] : memref<1x8xf32, #tpu.memory_space<vmem>>, vector<1x8xf32>
    tpu.vector_store %arg13[%c0_60, %c0_61], %121 {strides = array<i32>} : memref<1x8xf32, #tpu.memory_space<vmem>>, vector<1x8xf32>,
    %c2_i32_62 = arith.constant 2 : i32
    %c8_i32_63 = arith.constant 8 : i32
    %123 = arith.muli %arg0, %c8_i32_63 : i32
    %c2_i32_64 = arith.constant 2 : i32
    %124 = arith.muli %c2_i32_64, %c2_i32_62 : i32
    %125 = arith.addi %123, %124 : i32
    %c2_i32_65 = arith.constant 2 : i32
    %126 = arith.muli %c2_i32_65, %c2_i32_62 : i32
    %127 = arith.index_cast %126 : i32 to index
    %c0_66 = arith.constant 0 : index
    %128 = vector.load %arg1[%127, %c0_66] : memref<8x4xf32, #tpu.memory_space<vmem>>, vector<1x4xf32>
    %129 = vector.broadcast %128 : vector<1x4xf32> to vector<8x4xf32>
    %130 = arith.mulf %15, %129 : vector<8x4xf32>
    %cst_67 = arith.constant dense<0.000000e+00> : vector<8xf32>
    %131 = vector.multi_reduction <add>, %130, %cst_67 [1] : vector<8x4xf32> to vector<8xf32>
    %132 = vector.shape_cast %131 : vector<8xf32> to vector<8x1xf32>
    %133 = arith.subf %132, %16 : vector<8x1xf32>
    %c2_i32_68 = arith.constant 2 : i32
    %134 = arith.muli %c2_i32_68, %c2_i32_62 : i32
    %135 = arith.index_cast %134 : i32 to index
    %c0_69 = arith.constant 0 : index
    %136 = vector.load %arg2[%135, %c0_69] : memref<8x1xf32, #tpu.memory_space<vmem>>, vector<1x1xf32>
    %137 = vector.broadcast %136 : vector<1x1xf32> to vector<8x1xf32>
    %138 = arith.subf %133, %137 : vector<8x1xf32>
    %139 = vector.broadcast %117 : vector<1x8xf32> to vector<8x8xf32>
    %140 = arith.addf %13, %139 : vector<8x8xf32>
    %cst_70 = arith.constant dense<0xFF800000> : vector<8xf32>
    %141 = vector.multi_reduction <maximumf>, %140, %cst_70 [1] : vector<8x8xf32> to vector<8xf32>
    %142 = vector.shape_cast %141 : vector<8xf32> to vector<8x1xf32>
    %143 = vector.broadcast %142 : vector<8x1xf32> to vector<8x8xf32>
    %144 = arith.subf %140, %143 : vector<8x8xf32>
    %145 = math.exp %144 : vector<8x8xf32>
    %cst_71 = arith.constant dense<0.000000e+00> : vector<8xf32>
    %146 = vector.multi_reduction <add>, %145, %cst_71 [1] : vector<8x8xf32> to vector<8xf32>
    %147 = vector.shape_cast %146 : vector<8xf32> to vector<8x1xf32>
    %148 = arith.addf %138, %142 : vector<8x1xf32>
    %149 = math.log %147 : vector<8x1xf32>
    %150 = arith.addf %148, %149 : vector<8x1xf32>
    %c0_i32_72 = arith.constant 0 : i32
    %151 = arith.cmpi eq, %125, %c0_i32_72 : i32
    %152 = arith.addf %138, %17 : vector<8x1xf32>
    %153 = arith.select %151, %152, %150 : vector<8x1xf32>
    %154 = vector.broadcast %153 : vector<8x1xf32> to vector<8x8xf32>
    %155 = arith.addf %14, %154 : vector<8x8xf32>
    %cst_73 = arith.constant dense<0xFF800000> : vector<8xf32>
    %156 = vector.multi_reduction <maximumf>, %155, %cst_73 [0] : vector<8x8xf32> to vector<8xf32>
    %157 = vector.shape_cast %156 : vector<8xf32> to vector<1x8xf32>
    %158 = vector.broadcast %157 : vector<1x8xf32> to vector<8x8xf32>
    %159 = arith.subf %155, %158 : vector<8x8xf32>
    %160 = math.exp %159 : vector<8x8xf32>
    %cst_74 = arith.constant dense<0.000000e+00> : vector<8xf32>
    %161 = vector.multi_reduction <add>, %160, %cst_74 [0] : vector<8x8xf32> to vector<8xf32>
    %162 = vector.shape_cast %161 : vector<8xf32> to vector<1x8xf32>
    %c2_i32_75 = arith.constant 2 : i32
    %163 = arith.muli %c2_i32_75, %c2_i32_62 : i32
    %c1_i32_76 = arith.constant 1 : i32
    %164 = arith.addi %163, %c1_i32_76 : i32
    %165 = arith.index_cast %164 : i32 to index
    %c0_77 = arith.constant 0 : index
    %166 = vector.load %arg11[%165, %c0_77] : memref<8x8xf32, #tpu.memory_space<vmem>>, vector<1x8xf32>
    %167 = arith.addf %166, %157 : vector<1x8xf32>
    %168 = math.log %162 : vector<1x8xf32>
    %169 = arith.addf %167, %168 : vector<1x8xf32>
    %c1_i32_78 = arith.constant 1 : i32
    %170 = arith.addi %125, %c1_i32_78 : i32
    %c7_i32_79 = arith.constant 7 : i32
    %171 = arith.cmpi eq, %170, %c7_i32_79 : i32
    %c0_80 = arith.constant 0 : index
    %c0_81 = arith.constant 0 : index
    %172 = vector.load %arg13[%c0_80, %c0_81] : memref<1x8xf32, #tpu.memory_space<vmem>>, vector<1x8xf32>
    %173 = arith.select %171, %169, %172 : vector<1x8xf32>
    %c0_82 = arith.constant 0 : index
    %c0_83 = arith.constant 0 : index
    %174 = vector.load %arg13[%c0_82, %c0_83] : memref<1x8xf32, #tpu.memory_space<vmem>>, vector<1x8xf32>
    tpu.vector_store %arg13[%c0_82, %c0_83], %173 {strides = array<i32>} : memref<1x8xf32, #tpu.memory_space<vmem>>, vector<1x8xf32>,
    %c3_i32 = arith.constant 3 : i32
    %c8_i32_84 = arith.constant 8 : i32
    %175 = arith.muli %arg0, %c8_i32_84 : i32
    %c2_i32_85 = arith.constant 2 : i32
    %176 = arith.muli %c2_i32_85, %c3_i32 : i32
    %177 = arith.addi %175, %176 : i32
    %c2_i32_86 = arith.constant 2 : i32
    %178 = arith.muli %c2_i32_86, %c3_i32 : i32
    %179 = arith.index_cast %178 : i32 to index
    %c0_87 = arith.constant 0 : index
    %180 = vector.load %arg1[%179, %c0_87] : memref<8x4xf32, #tpu.memory_space<vmem>>, vector<1x4xf32>
    %181 = vector.broadcast %180 : vector<1x4xf32> to vector<8x4xf32>
    %182 = arith.mulf %15, %181 : vector<8x4xf32>
    %cst_88 = arith.constant dense<0.000000e+00> : vector<8xf32>
    %183 = vector.multi_reduction <add>, %182, %cst_88 [1] : vector<8x4xf32> to vector<8xf32>
    %184 = vector.shape_cast %183 : vector<8xf32> to vector<8x1xf32>
    %185 = arith.subf %184, %16 : vector<8x1xf32>
    %c2_i32_89 = arith.constant 2 : i32
    %186 = arith.muli %c2_i32_89, %c3_i32 : i32
    %187 = arith.index_cast %186 : i32 to index
    %c0_90 = arith.constant 0 : index
    %188 = vector.load %arg2[%187, %c0_90] : memref<8x1xf32, #tpu.memory_space<vmem>>, vector<1x1xf32>
    %189 = vector.broadcast %188 : vector<1x1xf32> to vector<8x1xf32>
    %190 = arith.subf %185, %189 : vector<8x1xf32>
    %191 = vector.broadcast %169 : vector<1x8xf32> to vector<8x8xf32>
    %192 = arith.addf %13, %191 : vector<8x8xf32>
    %cst_91 = arith.constant dense<0xFF800000> : vector<8xf32>
    %193 = vector.multi_reduction <maximumf>, %192, %cst_91 [1] : vector<8x8xf32> to vector<8xf32>
    %194 = vector.shape_cast %193 : vector<8xf32> to vector<8x1xf32>
    %195 = vector.broadcast %194 : vector<8x1xf32> to vector<8x8xf32>
    %196 = arith.subf %192, %195 : vector<8x8xf32>
    %197 = math.exp %196 : vector<8x8xf32>
    %cst_92 = arith.constant dense<0.000000e+00> : vector<8xf32>
    %198 = vector.multi_reduction <add>, %197, %cst_92 [1] : vector<8x8xf32> to vector<8xf32>
    %199 = vector.shape_cast %198 : vector<8xf32> to vector<8x1xf32>
    %200 = arith.addf %190, %194 : vector<8x1xf32>
    %201 = math.log %199 : vector<8x1xf32>
    %202 = arith.addf %200, %201 : vector<8x1xf32>
    %c0_i32_93 = arith.constant 0 : i32
    %203 = arith.cmpi eq, %177, %c0_i32_93 : i32
    %204 = arith.addf %190, %17 : vector<8x1xf32>
    %205 = arith.select %203, %204, %202 : vector<8x1xf32>
    %206 = vector.broadcast %205 : vector<8x1xf32> to vector<8x8xf32>
    %207 = arith.addf %14, %206 : vector<8x8xf32>
    %cst_94 = arith.constant dense<0xFF800000> : vector<8xf32>
    %208 = vector.multi_reduction <maximumf>, %207, %cst_94 [0] : vector<8x8xf32> to vector<8xf32>
    %209 = vector.shape_cast %208 : vector<8xf32> to vector<1x8xf32>
    %210 = vector.broadcast %209 : vector<1x8xf32> to vector<8x8xf32>
    %211 = arith.subf %207, %210 : vector<8x8xf32>
    %212 = math.exp %211 : vector<8x8xf32>
    %cst_95 = arith.constant dense<0.000000e+00> : vector<8xf32>
    %213 = vector.multi_reduction <add>, %212, %cst_95 [0] : vector<8x8xf32> to vector<8xf32>
    %214 = vector.shape_cast %213 : vector<8xf32> to vector<1x8xf32>
    %c2_i32_96 = arith.constant 2 : i32
    %215 = arith.muli %c2_i32_96, %c3_i32 : i32
    %c1_i32_97 = arith.constant 1 : i32
    %216 = arith.addi %215, %c1_i32_97 : i32
    %217 = arith.index_cast %216 : i32 to index
    %c0_98 = arith.constant 0 : index
    %218 = vector.load %arg11[%217, %c0_98] : memref<8x8xf32, #tpu.memory_space<vmem>>, vector<1x8xf32>
    %219 = arith.addf %218, %209 : vector<1x8xf32>
    %220 = math.log %214 : vector<1x8xf32>
    %221 = arith.addf %219, %220 : vector<1x8xf32>
    %c1_i32_99 = arith.constant 1 : i32
    %222 = arith.addi %177, %c1_i32_99 : i32
    %c7_i32_100 = arith.constant 7 : i32
    %223 = arith.cmpi eq, %222, %c7_i32_100 : i32
    %c0_101 = arith.constant 0 : index
    %c0_102 = arith.constant 0 : index
    %224 = vector.load %arg13[%c0_101, %c0_102] : memref<1x8xf32, #tpu.memory_space<vmem>>, vector<1x8xf32>
    %225 = arith.select %223, %221, %224 : vector<1x8xf32>
    %c0_103 = arith.constant 0 : index
    %c0_104 = arith.constant 0 : index
    %226 = vector.load %arg13[%c0_103, %c0_104] : memref<1x8xf32, #tpu.memory_space<vmem>>, vector<1x8xf32>
    tpu.vector_store %arg13[%c0_103, %c0_104], %225 {strides = array<i32>} : memref<1x8xf32, #tpu.memory_space<vmem>>, vector<1x8xf32>,
    %c4_i32 = arith.constant 4 : i32
    %c0_105 = arith.constant 0 : index
    %c0_106 = arith.constant 0 : index
    %227 = vector.load %arg12[%c0_105, %c0_106] : memref<1x8xf32, #tpu.memory_space<vmem>>, vector<1x8xf32>
    tpu.vector_store %arg12[%c0_105, %c0_106], %221 {strides = array<i32>} : memref<1x8xf32, #tpu.memory_space<vmem>>, vector<1x8xf32>,
    %c0_i32_107 = arith.constant 0 : i32
    %228 = arith.cmpi eq, %arg0, %c0_i32_107 : i32
    %229 = arith.extui %228 : i1 to i32
    %c0_i32_108 = arith.constant 0 : i32
    %230 = arith.cmpi ne, %229, %c0_i32_108 : i32
    scf.if %230 {
      %c0_109 = arith.constant 0 : index
      %c0_110 = arith.constant 0 : index
      %231 = vector.load %arg13[%c0_109, %c0_110] : memref<1x8xf32, #tpu.memory_space<vmem>>, vector<1x8xf32>
      %cst_111 = arith.constant dense<0xFF800000> : vector<1xf32>
      %232 = vector.multi_reduction <maximumf>, %231, %cst_111 [1] : vector<1x8xf32> to vector<1xf32>
      %233 = vector.shape_cast %232 : vector<1xf32> to vector<1x1xf32>
      %234 = vector.broadcast %233 : vector<1x1xf32> to vector<1x8xf32>
      %235 = arith.subf %231, %234 : vector<1x8xf32>
      %236 = math.exp %235 : vector<1x8xf32>
      %cst_112 = arith.constant dense<0.000000e+00> : vector<1xf32>
      %237 = vector.multi_reduction <add>, %236, %cst_112 [1] : vector<1x8xf32> to vector<1xf32>
      %238 = vector.shape_cast %237 : vector<1xf32> to vector<1x1xf32>
      %239 = math.log %238 : vector<1x1xf32>
      %240 = arith.addf %233, %239 : vector<1x1xf32>
      %c0_113 = arith.constant 0 : index
      %c0_114 = arith.constant 0 : index
      %241 = vector.load %arg10[%c0_113, %c0_114] : memref<1x1xf32, #tpu.memory_space<vmem>>, vector<1x1xf32>
      tpu.vector_store %arg10[%c0_113, %c0_114], %240 {strides = array<i32>} : memref<1x1xf32, #tpu.memory_space<vmem>>, vector<1x1xf32>,
    } else {
    }
    return
  }
  func.func @transform_0(%arg0: i32) -> (i32, i32) {
    %c0_i32 = arith.constant 0 : i32
    %c0_i32_0 = arith.constant 0 : i32
    return %arg0, %c0_i32 : i32, i32
  }
  func.func @transform_1(%arg0: i32) -> (i32, i32) {
    %c0_i32 = arith.constant 0 : i32
    %c0_i32_0 = arith.constant 0 : i32
    return %arg0, %c0_i32 : i32, i32
  }
  func.func @transform_2(%arg0: i32) -> (i32, i32) {
    %c0_i32 = arith.constant 0 : i32
    %c0_i32_0 = arith.constant 0 : i32
    %c0_i32_1 = arith.constant 0 : i32
    return %c0_i32, %c0_i32_0 : i32, i32
  }
  func.func @transform_3(%arg0: i32) -> (i32, i32) {
    %c0_i32 = arith.constant 0 : i32
    %c0_i32_0 = arith.constant 0 : i32
    %c0_i32_1 = arith.constant 0 : i32
    return %c0_i32, %c0_i32_0 : i32, i32
  }
  func.func @transform_4(%arg0: i32) -> (i32, i32) {
    %c0_i32 = arith.constant 0 : i32
    %c0_i32_0 = arith.constant 0 : i32
    %c0_i32_1 = arith.constant 0 : i32
    return %c0_i32, %c0_i32_0 : i32, i32
  }
  func.func @transform_5(%arg0: i32) -> (i32, i32) {
    %c0_i32 = arith.constant 0 : i32
    %c0_i32_0 = arith.constant 0 : i32
    %c0_i32_1 = arith.constant 0 : i32
    return %c0_i32, %c0_i32_0 : i32, i32
  }
  func.func @transform_6(%arg0: i32) -> (i32, i32) {
    %c0_i32 = arith.constant 0 : i32
    %c0_i32_0 = arith.constant 0 : i32
    %c0_i32_1 = arith.constant 0 : i32
    return %c0_i32, %c0_i32_0 : i32, i32
  }
  func.func @transform_7(%arg0: i32) -> (i32, i32) {
    %c0_i32 = arith.constant 0 : i32
    %c0_i32_0 = arith.constant 0 : i32
    %c0_i32_1 = arith.constant 0 : i32
    return %c0_i32, %c0_i32_0 : i32, i32
  }
  func.func @transform_8(%arg0: i32) -> (i32, i32) {
    %c0_i32 = arith.constant 0 : i32
    %c0_i32_0 = arith.constant 0 : i32
    %c0_i32_1 = arith.constant 0 : i32
    return %c0_i32, %c0_i32_0 : i32, i32
  }
  func.func @transform_9(%arg0: i32) -> (i32, i32) {
    %c0_i32 = arith.constant 0 : i32
    %c0_i32_0 = arith.constant 0 : i32
    %c0_i32_1 = arith.constant 0 : i32
    return %c0_i32, %c0_i32_0 : i32, i32
  }
}

</mosaic_0001>

<bundles_post_ra>
// kernel: tpu_custom_call.1
= control target key start
LH: loop header
LB: loop body
LE: loop exit
PB: predicated region body
PF: predicated region fallthrough
CT: control target
= control target key end

     0   :  { %vm35_vm0 = vcmask 31744   ;;  %vm39_vm1 = vcmask 1043456   ;;  %s632_s0 = inlined_call_operand.vmem [shape: f32[8,4], index: 0, kind: input, shape index: {}]   ;;  %s633_s1 = inlined_call_operand.vmem [shape: f32[8,1], index: 1, kind: input, shape index: {}]   ;;  %s634_s2 = inlined_call_operand.vmem [shape: f32[4,8], index: 2, kind: input, shape index: {}]   ;;  %s635_s3 = inlined_call_operand.vmem [shape: f32[8,4], index: 3, kind: input, shape index: {}]   ;;  %s636_s4 = inlined_call_operand.vmem [shape: f32[1,8], index: 4, kind: input, shape index: {}]   ;;  %s637_s5 = inlined_call_operand.vmem [shape: f32[8,1], index: 5, kind: input, shape index: {}]   ;;  %s638_s6 = inlined_call_operand.vmem [shape: f32[8,8], index: 6, kind: input, shape index: {}]   ;;  %s639_s7 = inlined_call_operand.vmem [shape: f32[8,8], index: 7, kind: input, shape index: {}]   ;;  %s640_s8 = inlined_call_operand.vmem [shape: f32[8,1], index: 8, kind: input, shape index: {}]   ;;  %s641_s9 = inlined_call_operand.hbm [shape: f32[1,1], index: 9, kind: output, shape index: {}]  }
   0x1   :  { %v531_v0 = vld [vmem:[%s635_s3] sm:$0xff] }
   0x2   :  { %v408_v1 = vld [vmem:[%s632_s0] ss:$0 sm:$0xff] }
   0x3   :  { %v34_v2 = vld [vmem:[%s634_s2] sm:$0xf]  ;;  %v93_v4 = vmul.f32 %v408_v1, %v531_v0 }
   0x4   :  { %v33_v3 = vld [vmem:[%s632_s0] sm:$0xff]  ;;  %400 = vmatpush.msk.msra.mxu0 %vm39_vm1, %v34_v2 }
   0x5   :  { %401 = vmatmul.msk.f32.vlgmr.msra.gmra.mxu0 %vm35_vm0, %v33_v3  ;;  %v94_v5 = vsel %vm35_vm0, %v93_v4, 0.0 }
   0x6   :  { %95 = vadd.xlane.f32.xlu0 %v94_v5 }
   0x7   :  { %14 = vsyncpa [#allocation6], 0  ;;  %v475_v6 = vmov 0   ;;  %v68_v7 = vld [vmem:[%s633_s1] sm:$0xff]  ;;  %vm75_vm2 = vcmask 64512   ;;  %vm81_vm3 = vcmask 57344  }
   0x8   :  { %405 = vset.pattern.permute.xlu0 %v475_v6  ;;  %406 = vset.pattern.permute.xlu1 %v475_v6  ;;  %v551_v8 = vld [vmem:[%s637_s5] sm:$0xff]  ;;  %s391_s3 = sshll.u32 %s641_s9, 4  ;;  %vm382_vm4 = vcmask 0   ;;  %s392_s3 = int_to_ptr.hbm [resolvable:$true] %s391_s3 }
   0x9   :  { %407 = vset.pattern.permute.xlu2 %v475_v6  ;;  %71 = vperm.xlu1 %406, %v68_v7   ;;  %v409_v9 = vld [vmem:[%s633_s1] ss:$0 sm:$0xff]  ;;  %v411_v52 = vld [vmem:[%s632_s0 + $0x2] ss:$0 sm:$0xff]  ;;  %v413_v3 = vld [vmem:[%s632_s0 + $0x4] ss:$0 sm:$0xff] }
   0xa   :  { %v88_v12 = vld [vmem:[%s640_s8] sm:$0xff]  ;;  %v164_v55 = vmul.f32 %v411_v52, %v531_v0  ;;  %v232_v5 = vmul.f32 %v413_v3, %v531_v0 }
   0xb   :  { %v410_v15 = vld [vmem:[%s636_s4] ss:$0 sm:$0xff]  ;;  %v412_v58 = vld [vmem:[%s633_s1 + $0x2] ss:$0 sm:$0xff] }
   0xc   :  { %v567_v20 = vld [vmem:[%s639_s7] sm:$0xff]  ;;  %v165_v56 = vsel %vm35_vm0, %v164_v55, 0.0  ;;  %v233_v7 = vsel %vm35_vm0, %v232_v5, 0.0 }
   0xd   :  { %v575_v45 = vld [vmem:[%s638_s6] sm:$0xff] }
  0x79   :  { %v96_v10 = vpop.xlane.xlu0 %95 }
  0x7a   :  { %v97_v11 = vsub.f32 %v96_v10, %v551_v8 }
  0x7b   :  { %v72_v18 = vpop.permute.xlu1 %71 }
  0x7c   :  { %v100_v13 = vsub.f32 %v97_v11, %v409_v9 }
  0x7e   :  { %v119_v14 = vadd.f32 %v100_v13, %v88_v12 }
  0x80   :  { %126 = vperm.xlu0 %405, %v119_v14  }
  0x82   :  { %v60_v16 = vpop.f32.mrf.mxu0 }
  0x83   :  { %v67_v17 = vsub.f32 %v60_v16, %v410_v15 }
  0x85   :  { %v74_v19 = vsub.f32 %v67_v17, %v72_v18 }
  0x87   :  { %76 = vst.msk [vmem:[#allocation2] sm:$0xff] %vm75_vm2, %v74_v19 }
  0x8e   :  { %v147_v40 = vld [vmem:[#allocation2 + $0x1] sm:$0x1] }
  0xf2   :  { %v127_v21 = vpop.permute.xlu0 %126 }
  0xf3   :  { %v129_v22 = vadd.f32 %v127_v21, %v567_v20 }
  0xf5   :  { %v130_v23 = vsel %vm75_vm2, %v129_v22, -inf }
  0xf6   :  { %v131_v24 = vrot.slane %v130_v23, 4 }
  0xf8   :  { %v132_v25 = vmax.f32 %v130_v23, %v131_v24 }
  0xfa   :  { %v133_v26 = vrot.slane %v132_v25, 2 }
  0xfc   :  { %v134_v27 = vmax.f32 %v132_v25, %v133_v26 }
  0xfe   :  { %v135_v28 = vrot.slane %v134_v27, 1 }
 0x100   :  { %v136_v29 = vmax.f32 %v134_v27, %v135_v28  ;;  %v216_v28 = vld [vmem:[#allocation2 + $0x3] sm:$0x1] }
 0x102   :  { %v137_v30 = vsub.f32 %v129_v22, %v136_v29  ;;  %v148_v42 = vadd.f32 %v147_v40, %v136_v29 }
 0x104   :  { %v138_v31 = vmul.f32 1.442695, %v137_v30 }
 0x106   :  { %417 = vpow2.f32 %v138_v31 }
 0x10c   :  { %v418_v32 = vpop.eup %417 }
 0x10d   :  { %v140_v33 = vsel %vm75_vm2, %v418_v32, 0.0 }
 0x10e   :  { %v141_v34 = vrot.slane %v140_v33, 4 }
 0x110   :  { %v142_v35 = vadd.f32 %v141_v34, %v140_v33 }
 0x112   :  { %v143_v36 = vrot.slane %v142_v35, 2 }
 0x114   :  { %v144_v37 = vadd.f32 %v143_v36, %v142_v35 }
 0x116   :  { %v145_v38 = vrot.slane %v144_v37, 1 }
 0x118   :  { %v146_v39 = vadd.f32 %v145_v38, %v144_v37 }
 0x11a   :  { %419 = vlog2.f32 %v146_v39 }
 0x120   :  { %v420_v41 = vpop.eup %419 }
 0x121   :  { %v150_v43 = vmul.f32 0.6931472, %v420_v41  ;;  %v414_v41 = vld [vmem:[%s633_s1 + $0x4] ss:$0 sm:$0xff] }
 0x123   :  { %v151_v44 = vadd.f32 %v150_v43, %v148_v42 }
 0x125   :  { %v172_v46 = vperm.slane %v151_v44, 0 }
 0x127   :  { %v173_v47 = vadd.f32 %v172_v46, %v575_v45 }
 0x129   :  { %v174_v48 = vsel %vm75_vm2, %v173_v47, -inf }
 0x12a   :  { %175 = vmax.xlane.f32.xlu1 %v174_v48 }
 0x132   :  { %234 = vadd.xlane.f32.xlu1 %v233_v7  ;;  %v284_v7 = vld [vmem:[#allocation2 + $0x5] sm:$0x1] }
 0x19d   :  { %v176_v49 = vpop.xlane.xlu1 %175 }
 0x19e   :  { %v177_v50 = vsub.f32 %v173_v47, %v176_v49 }
 0x1a0   :  { %v178_v51 = vmul.f32 1.442695, %v177_v50 }
 0x1a2   :  { %421 = vpow2.f32 %v178_v51 }
 0x1a5   :  { %v235_v40 = vpop.xlane.xlu1 %234 }
 0x1a6   :  { %v236_v42 = vsub.f32 %v235_v40, %v551_v8 }
 0x1a8   :  { %v422_v53 = vpop.eup %421  ;;  %v239_v44 = vsub.f32 %v236_v42, %v414_v41 }
 0x1a9   :  { %v180_v54 = vsel %vm75_vm2, %v422_v53, 0.0 }
 0x1aa   :  { %181 = vadd.xlane.f32.xlu2 %v180_v54 }
 0x1b2   :  { %166 = vadd.xlane.f32.xlu2 %v165_v56 }
 0x21d   :  { %v182_v57 = vpop.xlane.xlu2 %181 }
 0x21e   :  { %423 = vlog2.f32 %v182_v57 }
 0x224   :  { %v424_v61 = vpop.eup %423 }
 0x225   :  { %v167_v59 = vpop.xlane.xlu2 %166  ;;  %v185_v63 = vmul.f32 0.6931472, %v424_v61 }
 0x226   :  { %v168_v60 = vsub.f32 %v167_v59, %v551_v8 }
 0x228   :  { %v171_v62 = vsub.f32 %v168_v60, %v412_v58 }
 0x22a   :  { %v183_v1 = vadd.f32 %v176_v49, %v171_v62 }
 0x22c   :  { %v186_v2 = vadd.f32 %v185_v63, %v183_v1 }
 0x22e   :  { %195 = vperm.xlu2 %407, %v186_v2  }
 0x288   :  { %v196_v4 = vpop.permute.xlu2 %195 }
 0x289   :  { %v198_v6 = vadd.f32 %v196_v4, %v567_v20 }
 0x28b   :  { %v199_v9 = vsel %vm75_vm2, %v198_v6, -inf }
 0x28c   :  { %v200_v10 = vrot.slane %v199_v9, 4 }
 0x28e   :  { %v201_v11 = vmax.f32 %v199_v9, %v200_v10 }
 0x290   :  { %v202_v12 = vrot.slane %v201_v11, 2 }
 0x292   :  { %v203_v13 = vmax.f32 %v201_v11, %v202_v12 }
 0x294   :  { %v204_v14 = vrot.slane %v203_v13, 1 }
 0x296   :  { %v205_v15 = vmax.f32 %v203_v13, %v204_v14  ;;  %v415_v14 = vld [vmem:[%s632_s0 + $0x6] ss:$0 sm:$0xff] }
 0x298   :  { %v206_v16 = vsub.f32 %v198_v6, %v205_v15  ;;  %v217_v29 = vadd.f32 %v216_v28, %v205_v15 }
 0x29a   :  { %v207_v17 = vmul.f32 1.442695, %v206_v16  ;;  %v300_v16 = vmul.f32 %v415_v14, %v531_v0 }
 0x29c   :  { %425 = vpow2.f32 %v207_v17  ;;  %v301_v17 = vsel %vm35_vm0, %v300_v16, 0.0 }
 0x2a2   :  { %v426_v18 = vpop.eup %425 }
 0x2a3   :  { %v209_v19 = vsel %vm75_vm2, %v426_v18, 0.0 }
 0x2a4   :  { %v210_v21 = vrot.slane %v209_v19, 4 }
 0x2a6   :  { %v211_v22 = vadd.f32 %v210_v21, %v209_v19 }
 0x2a8   :  { %v212_v23 = vrot.slane %v211_v22, 2 }
 0x2aa   :  { %v213_v24 = vadd.f32 %v212_v23, %v211_v22 }
 0x2ac   :  { %v214_v25 = vrot.slane %v213_v24, 1 }
 0x2ae   :  { %v215_v26 = vadd.f32 %v214_v25, %v213_v24 }
 0x2b0   :  { %427 = vlog2.f32 %v215_v26  ;;  %v416_v26 = vld [vmem:[%s633_s1 + $0x6] ss:$0 sm:$0xff]  ;;  %s477_s1 = smov [#allocation5]  }
 0x2b1   :  { %s389_s14 = sshll.u32 %s477_s1, 4  ;;  %s390_s14 = int_to_ptr.vmem [resolvable:$true] %s389_s14 }
 0x2b6   :  { %v428_v27 = vpop.eup %427 }
 0x2b7   :  { %v219_v30 = vmul.f32 0.6931472, %v428_v27 }
 0x2b9   :  { %v220_v31 = vadd.f32 %v219_v30, %v217_v29 }
 0x2bb   :  { %v240_v32 = vperm.slane %v220_v31, 0 }
 0x2bd   :  { %v241_v33 = vadd.f32 %v240_v32, %v575_v45 }
 0x2bf   :  { %v242_v34 = vsel %vm75_vm2, %v241_v33, -inf }
 0x2c0   :  { %243 = vmax.xlane.f32.xlu2 %v242_v34 }
 0x333   :  { %v244_v35 = vpop.xlane.xlu2 %243 }
 0x334   :  { %v245_v36 = vsub.f32 %v241_v33, %v244_v35  ;;  %v251_v47 = vadd.f32 %v244_v35, %v239_v44 }
 0x336   :  { %v246_v37 = vmul.f32 1.442695, %v245_v36 }
 0x338   :  { %429 = vpow2.f32 %v246_v37 }
 0x33e   :  { %v430_v38 = vpop.eup %429 }
 0x33f   :  { %v248_v39 = vsel %vm75_vm2, %v430_v38, 0.0 }
 0x340   :  { %249 = vadd.xlane.f32.xlu0 %v248_v39 }
 0x3b3   :  { %v250_v43 = vpop.xlane.xlu0 %249 }
 0x3b4   :  { %431 = vlog2.f32 %v250_v43 }
 0x3ba   :  { %v432_v46 = vpop.eup %431 }
 0x3bb   :  { %v253_v48 = vmul.f32 0.6931472, %v432_v46 }
 0x3bd   :  { %v254_v49 = vadd.f32 %v253_v48, %v251_v47 }
 0x3bf   :  { %263 = vperm.xlu1 %406, %v254_v49  }
 0x431   :  { %v264_v50 = vpop.permute.xlu1 %263 }
 0x432   :  { %v266_v51 = vadd.f32 %v264_v50, %v567_v20 }
 0x434   :  { %v267_v52 = vsel %vm75_vm2, %v266_v51, -inf }
 0x435   :  { %v268_v53 = vrot.slane %v267_v52, 4 }
 0x437   :  { %v269_v54 = vmax.f32 %v267_v52, %v268_v53 }
 0x439   :  { %v270_v55 = vrot.slane %v269_v54, 2 }
 0x43b   :  { %v271_v56 = vmax.f32 %v269_v54, %v270_v55  ;;  %v352_v54 = vld [vmem:[#allocation2 + $0x7] sm:$0x1] }
 0x43d   :  { %v272_v57 = vrot.slane %v271_v56, 1 }
 0x43f   :  { %v273_v58 = vmax.f32 %v271_v56, %v272_v57 }
 0x441   :  { %v274_v59 = vsub.f32 %v266_v51, %v273_v58  ;;  %v285_v9 = vadd.f32 %v284_v7, %v273_v58 }
 0x443   :  { %v275_v60 = vmul.f32 1.442695, %v274_v59 }
 0x445   :  { %433 = vpow2.f32 %v275_v60 }
 0x44b   :  { %v434_v61 = vpop.eup %433 }
 0x44c   :  { %v277_v62 = vsel %vm75_vm2, %v434_v61, 0.0 }
 0x44d   :  { %v278_v63 = vrot.slane %v277_v62, 4 }
 0x44f   :  { %v279_v1 = vadd.f32 %v278_v63, %v277_v62 }
 0x451   :  { %v280_v2 = vrot.slane %v279_v1, 2 }
 0x453   :  { %v281_v3 = vadd.f32 %v280_v2, %v279_v1 }
 0x455   :  { %v282_v4 = vrot.slane %v281_v3, 1 }
 0x457   :  { %v283_v5 = vadd.f32 %v282_v4, %v281_v3 }
 0x459   :  { %435 = vlog2.f32 %v283_v5 }
 0x45f   :  { %v436_v6 = vpop.eup %435 }
 0x460   :  { %v287_v10 = vmul.f32 0.6931472, %v436_v6 }
 0x462   :  { %v288_v11 = vadd.f32 %v287_v10, %v285_v9 }
 0x464   :  { %v308_v12 = vperm.slane %v288_v11, 0 }
 0x466   :  { %v309_v13 = vadd.f32 %v308_v12, %v575_v45  ;;  %v476_v45 = vmov 0.0  }
 0x467   :  { %83 = vst.msk [vmem:[#allocation4] sm:$0x1] %vm81_vm3, %v476_v45 }
 0x468   :  { %v310_v15 = vsel %vm75_vm2, %v309_v13, -inf }
 0x469   :  { %311 = vmax.xlane.f32.xlu2 %v310_v15 }
 0x46e   :  { %v154_v24 = vld [vmem:[#allocation4] sm:$0x1] }
 0x46f   :  { %160 = vst.msk [vmem:[#allocation4] sm:$0x1] %vm81_vm3, %v154_v24 }
 0x471   :  { %302 = vadd.xlane.f32.xlu2 %v301_v17 }
 0x476   :  { %v223_v0 = vld [vmem:[#allocation4] sm:$0x1] }
 0x477   :  { %228 = vst.msk [vmem:[#allocation4] sm:$0x1] %vm81_vm3, %v223_v0 }
 0x47e   :  { %v291_v30 = vld [vmem:[#allocation4] sm:$0x1] }
 0x47f   :  { %296 = vst.msk [vmem:[#allocation4] sm:$0x1] %vm81_vm3, %v291_v30 }
 0x4dc   :  { %v312_v18 = vpop.xlane.xlu2 %311 }
 0x4dd   :  { %v313_v19 = vsub.f32 %v309_v13, %v312_v18 }
 0x4df   :  { %v314_v21 = vmul.f32 1.442695, %v313_v19 }
 0x4e1   :  { %437 = vpow2.f32 %v314_v21 }
 0x4e4   :  { %v303_v25 = vpop.xlane.xlu2 %302 }
 0x4e5   :  { %v304_v27 = vsub.f32 %v303_v25, %v551_v8 }
 0x4e7   :  { %v438_v22 = vpop.eup %437  ;;  %v307_v29 = vsub.f32 %v304_v27, %v416_v26 }
 0x4e8   :  { %v316_v23 = vsel %vm75_vm2, %v438_v22, 0.0 }
 0x4e9   :  { %317 = vadd.xlane.f32.xlu1 %v316_v23  ;;  %v319_v32 = vadd.f32 %v312_v18, %v307_v29 }
 0x55c   :  { %v318_v28 = vpop.xlane.xlu1 %317 }
 0x55d   :  { %439 = vlog2.f32 %v318_v28 }
 0x563   :  { %v440_v31 = vpop.eup %439 }
 0x564   :  { %v321_v33 = vmul.f32 0.6931472, %v440_v31 }
 0x566   :  { %v322_v34 = vadd.f32 %v321_v33, %v319_v32 }
 0x568   :  { %331 = vperm.xlu0 %405, %v322_v34  }
 0x5da   :  { %v332_v35 = vpop.permute.xlu0 %331 }
 0x5db   :  { %v334_v36 = vadd.f32 %v332_v35, %v567_v20 }
 0x5dd   :  { %v335_v37 = vsel %vm75_vm2, %v334_v36, -inf }
 0x5de   :  { %v336_v38 = vrot.slane %v335_v37, 4 }
 0x5e0   :  { %v337_v39 = vmax.f32 %v335_v37, %v336_v38 }
 0x5e2   :  { %v338_v40 = vrot.slane %v337_v39, 2 }
 0x5e4   :  { %v339_v8 = vmax.f32 %v337_v39, %v338_v40 }
 0x5e6   :  { %v340_v41 = vrot.slane %v339_v8, 1 }
 0x5e8   :  { %v341_v42 = vmax.f32 %v339_v8, %v340_v41 }
 0x5ea   :  { %v342_v43 = vsub.f32 %v334_v36, %v341_v42  ;;  %v353_v55 = vadd.f32 %v352_v54, %v341_v42 }
 0x5ec   :  { %v343_v44 = vmul.f32 1.442695, %v342_v43 }
 0x5ee   :  { %441 = vpow2.f32 %v343_v44 }
 0x5f4   :  { %v442_v46 = vpop.eup %441 }
 0x5f5   :  { %v345_v47 = vsel %vm75_vm2, %v442_v46, 0.0 }
 0x5f6   :  { %v346_v48 = vrot.slane %v345_v47, 4 }
 0x5f8   :  { %v347_v49 = vadd.f32 %v346_v48, %v345_v47 }
 0x5fa   :  { %v348_v50 = vrot.slane %v347_v49, 2 }
 0x5fc   :  { %v349_v51 = vadd.f32 %v348_v50, %v347_v49 }
 0x5fe   :  { %v350_v52 = vrot.slane %v349_v51, 1 }
 0x600   :  { %v351_v20 = vadd.f32 %v350_v52, %v349_v51 }
 0x602   :  { %443 = vlog2.f32 %v351_v20 }
 0x608   :  { %v444_v53 = vpop.eup %443 }
 0x609   :  { %v355_v56 = vmul.f32 0.6931472, %v444_v53 }
 0x60b   :  { %v356_v57 = vadd.f32 %v355_v56, %v353_v55 }
 0x60d   :  { %364 = vst.msk [vmem:[#allocation4] sm:$0x1] %vm81_vm3, %v356_v57 }
 0x614   :  { %v369_v58 = vld [vmem:[#allocation4] sm:$0x1] }
 0x615   :  { %v370_v59 = vsel %vm81_vm3, %v369_v58, -inf }
 0x616   :  { %371 = vmax.xlane.f32.xlu2 %v370_v59 }
 0x689   :  { %v372_v60 = vpop.xlane.xlu2 %371 }
 0x68a   :  { %v373_v61 = vsub.f32 %v369_v58, %v372_v60 }
 0x68c   :  { %v374_v62 = vmul.f32 1.442695, %v373_v61 }
 0x68e   :  { %445 = vpow2.f32 %v374_v62 }
 0x694   :  { %v446_v63 = vpop.eup %445 }
 0x695   :  { %v376_v1 = vsel %vm81_vm3, %v446_v63, 0.0 }
 0x696   :  { %377 = vadd.xlane.f32.xlu2 %v376_v1 }
 0x709   :  { %v378_v2 = vpop.xlane.xlu2 %377 }
 0x70a   :  { %447 = vlog2.f32 %v378_v2 }
 0x710   :  { %v448_v3 = vpop.eup %447 }
 0x711   :  { %v380_v4 = vmul.f32 0.6931472, %v448_v3 }
 0x713   :  { %v381_v5 = vadd.f32 %v380_v4, %v372_v60 }
 0x715   :  { %383 = vst.msk [vmem:[#allocation5] sm:$0x1] %vm382_vm4, %v381_v5 }
 0x716   :  { %394 = dma.vmem_to_hbm [thread:$0]  %s390_s14, 16, %s392_s3, [#allocation6]  }
 0x717   :  { %473 = dma.done.wait [#allocation6], 16  }
 0x718   :  { %474 = vsyncadd [#allocation6], 4294967280 }
 0x719   :  { %399 = vsyncpa [#allocation6], 1 }

</bundles_post_ra>
